<compile_context>
chip_gen: v6e
topology: v6e:2x2x1
jax: 0.10.0
libtpu: 0.0.40
codegen_flags: <defaults>
</compile_context>

<pallas_src>
import functools

import jax
import jax.numpy as jnp
from jax.experimental import pallas as pl
from jax.experimental.pallas import tpu as pltpu


def _convlstm_kernel(xg_ref, wh_ref, wci_ref, wcf_ref, wco_ref,
                     out_ref, hpad_ref, c_ref, *, kernel_size, padding,
                     hidden, width, activation):
    """One (batch element, time step) of the recurrence.

    xg_ref  : (Hgt, 4*WC)        f32    precomputed conv(X_t, Wx) + bias, gate-major cols
    wh_ref  : (K, Wd*Cout, 4*WC) bf16   banded H weight (one band per row tap kh)
    wc*_ref : (Hgt, WC)          f32    peephole weights, lane-dense
    out_ref : (Hgt, WC)          f32    H_t, lane-dense
    hpad_ref: (Hp, Wd*Cout)      bf16   height-padded H carry (scratch)
    c_ref   : (Hgt, WC)          f32    C carry (scratch)
    """
    t = pl.program_id(1)
    act = jnp.tanh if activation == "tanh" else (lambda v: jnp.maximum(v, 0.0))

    K = kernel_size
    p = padding
    Cout = hidden
    Wd = width
    Hgt = c_ref.shape[0]
    WC = Wd * Cout                      # lane-dense minor dim (128 in the demo)

    # New batch element / first step: reset the recurrent state.  The height halo
    # of hpad is zeroed here and never overwritten afterwards.
    @pl.when(t == 0)
    def _():
        hpad_ref[...] = jnp.zeros_like(hpad_ref)
        c_ref[...] = jnp.zeros_like(c_ref)

    # All four gates for all (x, c) output columns in one f32 accumulator.
    # X contribution + bias was precomputed outside the recurrence.
    acc = xg_ref[...]
    # Recurrent H contribution: one bf16 MXU matmul per row tap kh,
    # contraction = Wd*Cout (the width taps are folded into the banded weight).
    for kh in range(K):
        slab = hpad_ref[kh:kh + Hgt, :]                 # (Hgt, Wd*Cout) bf16
        acc = acc + jnp.dot(slab, wh_ref[kh],
                            preferred_element_type=jnp.float32)

    # Gate split: aligned, lane-dense 128-wide column slices (free).
    i_conv = acc[:, 0 * WC:1 * WC]
    f_conv = acc[:, 1 * WC:2 * WC]
    g_conv = acc[:, 2 * WC:3 * WC]
    o_conv = acc[:, 3 * WC:4 * WC]

    # Peephole LSTM gate math, f32, fully lane-dense (Hgt, WC) tensors.
    c_prev = c_ref[...]
    input_gate = jax.nn.sigmoid(i_conv + wci_ref[...] * c_prev)
    forget_gate = jax.nn.sigmoid(f_conv + wcf_ref[...] * c_prev)
    c_new = forget_gate * c_prev + input_gate * act(g_conv)
    output_gate = jax.nn.sigmoid(o_conv + wco_ref[...] * c_new)
    h_new = output_gate * act(c_new)

    # Carries: C in f32, H in bf16 inside the height-padded scratch (interior rows,
    # full 128-lane width — no lane masking).
    c_ref[...] = c_new
    hpad_ref[p:p + Hgt, :] = h_new.astype(hpad_ref.dtype)
    # Lane-dense (Hgt, 128) unmasked output store.
    out_ref[...] = h_new.astype(out_ref.dtype)


def _banded_width_weight_h(w_gckk, Wd, K, p):
    """Fold the width taps AND the width zero-padding into a banded matmul weight
    that acts on the UNPADDED-width H carry.

    w_gckk: (4, Cout, Cin_, K, K) slice of the torch conv weight (gate-major).
    Returns (K, Wd*Cin_, 4*Wd*Cout) with
      out[kh, x_in*Cin_+ci, g*Wd*Cout + x*Cout + co] =
          W[g, co, ci, kh, x_in - x + p]  if 0 <= x_in - x + p < K else 0
    """
    kw = jnp.arange(Wd)[:, None] - jnp.arange(Wd)[None, :] + p     # x_in - x + p
    valid = (kw >= 0) & (kw < K)
    kw_c = jnp.clip(kw, 0, K - 1)
    t = w_gckk[..., kw_c]                          # (4, Cout, Cin_, K, Wd_in, Wd_out)
    t = jnp.where(valid, t, 0.0)
    t = jnp.transpose(t, (3, 4, 2, 0, 5, 1))       # (K, Wd_in, Cin_, 4, Wd_out, Cout)
    four, Cout, Cin_ = w_gckk.shape[0], w_gckk.shape[1], w_gckk.shape[2]
    return t.reshape(K, Wd * Cin_, four * Wd * Cout)


def convlstm_forward(x_bcthw, conv_w, conv_b, w_ci, w_cf, w_co, *,
                     kernel_size, padding, activation):
    """x_bcthw: (B, Cin, T, H, W); conv_w: (4*Cout, Cin+Cout, K, K) torch layout;
    conv_b: (4*Cout,); w_ci/w_cf/w_co: (Cout, H, W).  Returns (B, Cout, T, H, W)."""
    B, Cin, T, Hgt, Wd = x_bcthw.shape
    Cout = w_ci.shape[0]
    K = kernel_size
    p = padding
    Hp = Hgt + 2 * p
    WC = Wd * Cout

    # ---- layout plumbing (plain JAX, runs once outside the recurrence) ----
    # X -> gate pre-activation for ALL time steps in one parallel conv (bf16 operands,
    # f32 accumulation — numerically equivalent to the kernel's MXU path).
    x_tbhwc = jnp.transpose(x_bcthw, (2, 0, 3, 4, 1)).astype(jnp.bfloat16)
    w_x = jnp.transpose(conv_w[:, :Cin], (2, 3, 1, 0)).astype(jnp.bfloat16)   # HWIO
    xconv = jax.lax.conv_general_dilated(
        x_tbhwc.reshape(T * B, Hgt, Wd, Cin), w_x, (1, 1),
        [(p, p), (p, p)], dimension_numbers=("NHWC", "HWIO", "NHWC"),
        preferred_element_type=jnp.float32)
    xconv = xconv + conv_b.astype(jnp.float32)[None, None, None, :]
    # channel = g*Cout + co  ->  gate-major lane-dense col = g*(Wd*Cout) + x*Cout + co
    xg = xconv.reshape(T, B, Hgt, Wd, 4, Cout)
    xg = jnp.transpose(xg, (0, 1, 2, 4, 3, 5)).reshape(T, B, Hgt, 4 * WC)

    # H conv weight -> banded matrices acting on the unpadded-width H carry,
    # gate-major output columns:  col = gate*(Wd*Cout) + x*Cout + co
    w5 = conv_w.reshape(4, Cout, Cin + Cout, K, K).astype(jnp.float32)
    wh = _banded_width_weight_h(w5[:, :, Cin:], Wd, K, p).astype(jnp.bfloat16)

    def peep(w):  # (Cout, H, W) -> lane-dense (Hgt, Wd*Cout)
        return jnp.transpose(w, (1, 2, 0)).reshape(Hgt, WC).astype(jnp.float32)

    wci, wcf, wco = peep(w_ci), peep(w_cf), peep(w_co)

    kernel = functools.partial(
        _convlstm_kernel, kernel_size=K, padding=p, hidden=Cout, width=Wd,
        activation=activation)

    out = pl.pallas_call(
        kernel,
        out_shape=jax.ShapeDtypeStruct((T, B, Hgt, WC), jnp.float32),
        grid_spec=pltpu.PrefetchScalarGridSpec(
            num_scalar_prefetch=0,
            # batch = "parallel" (v7x megacore), time = sequential recurrence.
            grid=(B, T),
            in_specs=[
                pl.BlockSpec((None, None, Hgt, 4 * WC),
                             lambda b, t: (t, b, 0, 0)),
                pl.BlockSpec((K, Wd * Cout, 4 * WC), lambda b, t: (0, 0, 0)),
                pl.BlockSpec((Hgt, WC), lambda b, t: (0, 0)),
                pl.BlockSpec((Hgt, WC), lambda b, t: (0, 0)),
                pl.BlockSpec((Hgt, WC), lambda b, t: (0, 0)),
            ],
            out_specs=pl.BlockSpec((None, None, Hgt, WC),
                                   lambda b, t: (t, b, 0, 0)),
            scratch_shapes=[
                pltpu.VMEM((Hp, WC), jnp.bfloat16),   # height-padded H carry
                pltpu.VMEM((Hgt, WC), jnp.float32),   # C carry
            ],
        ),
        compiler_params=pltpu.CompilerParams(
            dimension_semantics=("parallel", "arbitrary")),
    )(xg, wh, wci, wcf, wco)

    # (T, B, Hgt, Wd*Cout) -> (B, Cout, T, Hgt, Wd) PyTorch layout.
    out = out.reshape(T, B, Hgt, Wd, Cout)
    return jnp.transpose(out, (1, 4, 0, 2, 3))


def convlstm_reference(x_bcthw, conv_w, conv_b, w_ci, w_cf, w_co, *,
                       padding, activation, match_bf16=True):
    """Pure-JAX reference (lax.conv).  With match_bf16=True the conv operands
    (X, W, and the H fed back into the conv) are rounded to bf16 exactly like the
    kernel's MXU path, so the comparison isolates kernel-logic errors."""
    B, Cin, T, Hgt, Wd = x_bcthw.shape
    Cout = w_ci.shape[0]
    act = jnp.tanh if activation == "tanh" else jax.nn.relu
    bf = ((lambda a: a.astype(jnp.bfloat16).astype(jnp.float32))
          if match_bf16 else (lambda a: a))
    x_tbhwc = bf(jnp.transpose(x_bcthw, (2, 0, 3, 4, 1)).astype(jnp.float32))
    w_hwio = bf(jnp.transpose(conv_w, (2, 3, 1, 0)).astype(jnp.float32))
    wci = jnp.transpose(w_ci, (1, 2, 0))[None].astype(jnp.float32)
    wcf = jnp.transpose(w_cf, (1, 2, 0))[None].astype(jnp.float32)
    wco = jnp.transpose(w_co, (1, 2, 0))[None].astype(jnp.float32)
    h = jnp.zeros((B, Hgt, Wd, Cout), jnp.float32)
    c = jnp.zeros_like(h)
    outs = []
    for t in range(T):
        z = jnp.concatenate([x_tbhwc[t], bf(h)], axis=-1)
        conv = jax.lax.conv_general_dilated(
            z, w_hwio, (1, 1), [(padding, padding), (padding, padding)],
            dimension_numbers=("NHWC", "HWIO", "NHWC"),
            preferred_element_type=jnp.float32)
        conv = conv + conv_b.astype(jnp.float32)[None, None, None, :]
        i_c, f_c, c_c, o_c = jnp.split(conv, 4, axis=-1)
        ig = jax.nn.sigmoid(i_c + wci * c)
        fg = jax.nn.sigmoid(f_c + wcf * c)
        c = fg * c + ig * act(c_c)
        og = jax.nn.sigmoid(o_c + wco * c)
        h = og * act(c)
        outs.append(h)
    out = jnp.stack(outs, axis=0)                  # (T, B, H, W, Cout)
    return jnp.transpose(out, (1, 4, 0, 2, 3))     # (B, Cout, T, H, W)


if __name__ == "__main__":
    # small deterministic config consistent with the module's forward
    B, Cin, Cout, T, Hgt, Wd = 2, 4, 8, 8, 16, 16
    K, p = 3, 1
    activation = "tanh"

    key = jax.random.PRNGKey(0)
    ks = jax.random.split(key, 6)
    x = jax.random.normal(ks[0], (B, Cin, T, Hgt, Wd), jnp.float32)

    # deterministic parameter init (Conv2d-style uniform; peepholes small normal)
    fan_in = (Cin + Cout) * K * K
    bound = 1.0 / (fan_in ** 0.5)
    conv_w = jax.random.uniform(ks[1], (4 * Cout, Cin + Cout, K, K),
                                jnp.float32, -bound, bound)
    conv_b = jax.random.uniform(ks[2], (4 * Cout,), jnp.float32, -bound, bound)
    w_ci = 0.1 * jax.random.normal(ks[3], (Cout, Hgt, Wd), jnp.float32)
    w_cf = 0.1 * jax.random.normal(ks[4], (Cout, Hgt, Wd), jnp.float32)
    w_co = 0.1 * jax.random.normal(ks[5], (Cout, Hgt, Wd), jnp.float32)

    out = convlstm_forward(x, conv_w, conv_b, w_ci, w_cf, w_co,
                           kernel_size=K, padding=p, activation=activation)
    out = jax.block_until_ready(out)
    assert out.shape == (B, Cout, T, Hgt, Wd), out.shape

    ref = jax.block_until_ready(
        convlstm_reference(x, conv_w, conv_b, w_ci, w_cf, w_co,
                           padding=p, activation=activation, match_bf16=True))
    max_err = float(jnp.max(jnp.abs(out - ref)))
    if not bool(jnp.all(jnp.isfinite(out))) or max_err > 5e-3:
        raise SystemExit(f"MISMATCH: max abs err = {max_err}")
    print("KERNEL_OK")
</pallas_src>

<mosaic_0001>
module attributes {stable_mosaic.version = 11 : i64} {
  func.func @_convlstm_kernel(%arg0: i32, %arg1: i32, %arg2: memref<1x1x16x512xf32, #tpu.memory_space<vmem>>, %arg3: memref<3x128x512xbf16, #tpu.memory_space<vmem>>, %arg4: memref<16x128xf32, #tpu.memory_space<vmem>>, %arg5: memref<16x128xf32, #tpu.memory_space<vmem>>, %arg6: memref<16x128xf32, #tpu.memory_space<vmem>>, %arg7: memref<1x1x16x128xf32, #tpu.memory_space<vmem>>, %arg8: memref<18x128xbf16, #tpu.memory_space<vmem>>, %arg9: memref<16x128xf32, #tpu.memory_space<vmem>>) attributes {dimension_semantics = [#tpu.dimension_semantics<parallel>, #tpu.dimension_semantics<arbitrary>], iteration_bounds = array<i64: 2, 8>, scalar_prefetch = 0 : i64, scratch_operands = 2 : i64, tpu.core_type = #tpu.core_type<tc>, window_params = [{transform_indices = @transform_0, window_bounds = array<i64: 1, 1, 16, 512>}, {pipeline_mode = #tpu.pipeline_mode<synchronous>, transform_indices = @transform_1, window_bounds = array<i64: 3, 128, 512>}, {pipeline_mode = #tpu.pipeline_mode<synchronous>, transform_indices = @transform_2, window_bounds = array<i64: 16, 128>}, {pipeline_mode = #tpu.pipeline_mode<synchronous>, transform_indices = @transform_3, window_bounds = array<i64: 16, 128>}, {pipeline_mode = #tpu.pipeline_mode<synchronous>, transform_indices = @transform_4, window_bounds = array<i64: 16, 128>}, {transform_indices = @transform_5, window_bounds = array<i64: 1, 1, 16, 128>}]} {
    %c0_i32 = arith.constant 0 : i32
    %0 = arith.cmpi eq, %arg1, %c0_i32 : i32
    %1 = arith.extui %0 : i1 to i32
    %c0_i32_0 = arith.constant 0 : i32
    %2 = arith.cmpi ne, %1, %c0_i32_0 : i32
    scf.if %2 {
      %cst_38 = arith.constant 0.000000e+00 : bf16
      %61 = vector.broadcast %cst_38 : bf16 to vector<18x128xbf16>
      %c0_39 = arith.constant 0 : index
      %c0_40 = arith.constant 0 : index
      %62 = vector.load %arg8[%c0_39, %c0_40] : memref<18x128xbf16, #tpu.memory_space<vmem>>, vector<18x128xbf16>
      tpu.vector_store %arg8[%c0_39, %c0_40], %61 {strides = array<i32>} : memref<18x128xbf16, #tpu.memory_space<vmem>>, vector<18x128xbf16>,
      %cst_41 = arith.constant 0.000000e+00 : f32
      %63 = vector.broadcast %cst_41 : f32 to vector<16x128xf32>
      %c0_42 = arith.constant 0 : index
      %c0_43 = arith.constant 0 : index
      %64 = vector.load %arg9[%c0_42, %c0_43] : memref<16x128xf32, #tpu.memory_space<vmem>>, vector<16x128xf32>
      tpu.vector_store %arg9[%c0_42, %c0_43], %63 {strides = array<i32>} : memref<16x128xf32, #tpu.memory_space<vmem>>, vector<16x128xf32>,
    } else {
    }
    %c0 = arith.constant 0 : index
    %c0_1 = arith.constant 0 : index
    %c0_2 = arith.constant 0 : index
    %c0_3 = arith.constant 0 : index
    %3 = vector.load %arg2[%c0, %c0_1, %c0_2, %c0_3] : memref<1x1x16x512xf32, #tpu.memory_space<vmem>>, vector<1x1x16x512xf32>
    %4 = vector.shape_cast %3 : vector<1x1x16x512xf32> to vector<16x512xf32>
    %c0_4 = arith.constant 0 : index
    %c0_5 = arith.constant 0 : index
    %5 = vector.load %arg8[%c0_4, %c0_5] : memref<18x128xbf16, #tpu.memory_space<vmem>>, vector<16x128xbf16>
    %c0_6 = arith.constant 0 : index
    %c0_7 = arith.constant 0 : index
    %c0_8 = arith.constant 0 : index
    %6 = vector.load %arg3[%c0_6, %c0_7, %c0_8] : memref<3x128x512xbf16, #tpu.memory_space<vmem>>, vector<1x128x512xbf16>
    %7 = vector.shape_cast %6 : vector<1x128x512xbf16> to vector<128x512xbf16>
    %cst = arith.constant dense<0.000000e+00> : vector<16x512xf32>
    %8 = tpu.matmul %5, %7, %cst {dimension_numbers = #tpu.dot_dimension_numbers<[1], [0], [0], [1], [0, 0, 1, 1], [], []>} : vector<16x128xbf16>, vector<128x512xbf16>, vector<16x512xf32> -> vector<16x512xf32>
    %9 = arith.addf %4, %8 : vector<16x512xf32>
    %c1 = arith.constant 1 : index
    %c0_9 = arith.constant 0 : index
    %10 = vector.load %arg8[%c1, %c0_9] : memref<18x128xbf16, #tpu.memory_space<vmem>>, vector<16x128xbf16>
    %c1_10 = arith.constant 1 : index
    %c0_11 = arith.constant 0 : index
    %c0_12 = arith.constant 0 : index
    %11 = vector.load %arg3[%c1_10, %c0_11, %c0_12] : memref<3x128x512xbf16, #tpu.memory_space<vmem>>, vector<1x128x512xbf16>
    %12 = vector.shape_cast %11 : vector<1x128x512xbf16> to vector<128x512xbf16>
    %cst_13 = arith.constant dense<0.000000e+00> : vector<16x512xf32>
    %13 = tpu.matmul %10, %12, %cst_13 {dimension_numbers = #tpu.dot_dimension_numbers<[1], [0], [0], [1], [0, 0, 1, 1], [], []>} : vector<16x128xbf16>, vector<128x512xbf16>, vector<16x512xf32> -> vector<16x512xf32>
    %14 = arith.addf %9, %13 : vector<16x512xf32>
    %c2 = arith.constant 2 : index
    %c0_14 = arith.constant 0 : index
    %15 = vector.load %arg8[%c2, %c0_14] : memref<18x128xbf16, #tpu.memory_space<vmem>>, vector<16x128xbf16>
    %c2_15 = arith.constant 2 : index
    %c0_16 = arith.constant 0 : index
    %c0_17 = arith.constant 0 : index
    %16 = vector.load %arg3[%c2_15, %c0_16, %c0_17] : memref<3x128x512xbf16, #tpu.memory_space<vmem>>, vector<1x128x512xbf16>
    %17 = vector.shape_cast %16 : vector<1x128x512xbf16> to vector<128x512xbf16>
    %cst_18 = arith.constant dense<0.000000e+00> : vector<16x512xf32>
    %18 = tpu.matmul %15, %17, %cst_18 {dimension_numbers = #tpu.dot_dimension_numbers<[1], [0], [0], [1], [0, 0, 1, 1], [], []>} : vector<16x128xbf16>, vector<128x512xbf16>, vector<16x512xf32> -> vector<16x512xf32>
    %19 = arith.addf %14, %18 : vector<16x512xf32>
    %20 = vector.extract_strided_slice %19 {offsets = [0, 0], sizes = [16, 128], strides = [1, 1]} : vector<16x512xf32> to vector<16x128xf32>
    %21 = vector.extract_strided_slice %19 {offsets = [0, 128], sizes = [16, 128], strides = [1, 1]} : vector<16x512xf32> to vector<16x128xf32>
    %22 = vector.extract_strided_slice %19 {offsets = [0, 256], sizes = [16, 128], strides = [1, 1]} : vector<16x512xf32> to vector<16x128xf32>
    %23 = vector.extract_strided_slice %19 {offsets = [0, 384], sizes = [16, 128], strides = [1, 1]} : vector<16x512xf32> to vector<16x128xf32>
    %c0_19 = arith.constant 0 : index
    %c0_20 = arith.constant 0 : index
    %24 = vector.load %arg9[%c0_19, %c0_20] : memref<16x128xf32, #tpu.memory_space<vmem>>, vector<16x128xf32>
    %c0_21 = arith.constant 0 : index
    %c0_22 = arith.constant 0 : index
    %25 = vector.load %arg4[%c0_21, %c0_22] : memref<16x128xf32, #tpu.memory_space<vmem>>, vector<16x128xf32>
    %26 = arith.mulf %25, %24 : vector<16x128xf32>
    %27 = arith.addf %20, %26 : vector<16x128xf32>
    %28 = arith.negf %27 : vector<16x128xf32>
    %29 = math.exp %28 : vector<16x128xf32>
    %cst_23 = arith.constant 1.000000e+00 : f32
    %30 = vector.broadcast %cst_23 : f32 to vector<16x128xf32>
    %31 = arith.addf %30, %29 : vector<16x128xf32>
    %32 = arith.divf %30, %31 : vector<16x128xf32>
    %c0_24 = arith.constant 0 : index
    %c0_25 = arith.constant 0 : index
    %33 = vector.load %arg5[%c0_24, %c0_25] : memref<16x128xf32, #tpu.memory_space<vmem>>, vector<16x128xf32>
    %34 = arith.mulf %33, %24 : vector<16x128xf32>
    %35 = arith.addf %21, %34 : vector<16x128xf32>
    %36 = arith.negf %35 : vector<16x128xf32>
    %37 = math.exp %36 : vector<16x128xf32>
    %cst_26 = arith.constant 1.000000e+00 : f32
    %38 = vector.broadcast %cst_26 : f32 to vector<16x128xf32>
    %39 = arith.addf %38, %37 : vector<16x128xf32>
    %40 = arith.divf %38, %39 : vector<16x128xf32>
    %41 = arith.mulf %40, %24 : vector<16x128xf32>
    %42 = math.tanh %22 : vector<16x128xf32>
    %43 = arith.mulf %32, %42 : vector<16x128xf32>
    %44 = arith.addf %41, %43 : vector<16x128xf32>
    %c0_27 = arith.constant 0 : index
    %c0_28 = arith.constant 0 : index
    %45 = vector.load %arg6[%c0_27, %c0_28] : memref<16x128xf32, #tpu.memory_space<vmem>>, vector<16x128xf32>
    %46 = arith.mulf %45, %44 : vector<16x128xf32>
    %47 = arith.addf %23, %46 : vector<16x128xf32>
    %48 = arith.negf %47 : vector<16x128xf32>
    %49 = math.exp %48 : vector<16x128xf32>
    %cst_29 = arith.constant 1.000000e+00 : f32
    %50 = vector.broadcast %cst_29 : f32 to vector<16x128xf32>
    %51 = arith.addf %50, %49 : vector<16x128xf32>
    %52 = arith.divf %50, %51 : vector<16x128xf32>
    %53 = math.tanh %44 : vector<16x128xf32>
    %54 = arith.mulf %52, %53 : vector<16x128xf32>
    %c0_30 = arith.constant 0 : index
    %c0_31 = arith.constant 0 : index
    %55 = vector.load %arg9[%c0_30, %c0_31] : memref<16x128xf32, #tpu.memory_space<vmem>>, vector<16x128xf32>
    tpu.vector_store %arg9[%c0_30, %c0_31], %44 {strides = array<i32>} : memref<16x128xf32, #tpu.memory_space<vmem>>, vector<16x128xf32>,
    %56 = arith.truncf %54 : vector<16x128xf32> to vector<16x128xbf16>
    %c1_32 = arith.constant 1 : index
    %c0_33 = arith.constant 0 : index
    %57 = vector.load %arg8[%c1_32, %c0_33] : memref<18x128xbf16, #tpu.memory_space<vmem>>, vector<16x128xbf16>
    tpu.vector_store %arg8[%c1_32, %c0_33], %56 {strides = array<i32>} : memref<18x128xbf16, #tpu.memory_space<vmem>>, vector<16x128xbf16>,
    %c0_34 = arith.constant 0 : index
    %c0_35 = arith.constant 0 : index
    %c0_36 = arith.constant 0 : index
    %c0_37 = arith.constant 0 : index
    %58 = vector.load %arg7[%c0_34, %c0_35, %c0_36, %c0_37] : memref<1x1x16x128xf32, #tpu.memory_space<vmem>>, vector<1x1x16x128xf32>
    %59 = vector.shape_cast %58 : vector<1x1x16x128xf32> to vector<16x128xf32>
    %60 = vector.shape_cast %54 : vector<16x128xf32> to vector<1x1x16x128xf32>
    tpu.vector_store %arg7[%c0_34, %c0_35, %c0_36, %c0_37], %60 {strides = array<i32>} : memref<1x1x16x128xf32, #tpu.memory_space<vmem>>, vector<1x1x16x128xf32>,
    return
  }
  func.func @transform_0(%arg0: i32, %arg1: i32) -> (i32, i32, i32, i32) {
    %c0_i32 = arith.constant 0 : i32
    %c0_i32_0 = arith.constant 0 : i32
    %c0_i32_1 = arith.constant 0 : i32
    return %arg1, %arg0, %c0_i32, %c0_i32_0 : i32, i32, i32, i32
  }
  func.func @transform_1(%arg0: i32, %arg1: i32) -> (i32, i32, i32) {
    %c0_i32 = arith.constant 0 : i32
    %c0_i32_0 = arith.constant 0 : i32
    %c0_i32_1 = arith.constant 0 : i32
    %c0_i32_2 = arith.constant 0 : i32
    return %c0_i32, %c0_i32_0, %c0_i32_1 : i32, i32, i32
  }
  func.func @transform_2(%arg0: i32, %arg1: i32) -> (i32, i32) {
    %c0_i32 = arith.constant 0 : i32
    %c0_i32_0 = arith.constant 0 : i32
    %c0_i32_1 = arith.constant 0 : i32
    return %c0_i32, %c0_i32_0 : i32, i32
  }
  func.func @transform_3(%arg0: i32, %arg1: i32) -> (i32, i32) {
    %c0_i32 = arith.constant 0 : i32
    %c0_i32_0 = arith.constant 0 : i32
    %c0_i32_1 = arith.constant 0 : i32
    return %c0_i32, %c0_i32_0 : i32, i32
  }
  func.func @transform_4(%arg0: i32, %arg1: i32) -> (i32, i32) {
    %c0_i32 = arith.constant 0 : i32
    %c0_i32_0 = arith.constant 0 : i32
    %c0_i32_1 = arith.constant 0 : i32
    return %c0_i32, %c0_i32_0 : i32, i32
  }
  func.func @transform_5(%arg0: i32, %arg1: i32) -> (i32, i32, i32, i32) {
    %c0_i32 = arith.constant 0 : i32
    %c0_i32_0 = arith.constant 0 : i32
    %c0_i32_1 = arith.constant 0 : i32
    return %arg1, %arg0, %c0_i32, %c0_i32_0 : i32, i32, i32, i32
  }
}

</mosaic_0001>

<bundles_post_ra>
// kernel: tpu_custom_call.1
= control target key start
LH: loop header
LB: loop body
LE: loop exit
PB: predicated region body
PF: predicated region fallthrough
CT: control target
= control target key end

     0   :  { %s2519_s0 = inlined_call_operand.hbm [shape: f32[8,2,16,512], index: 0, kind: input, shape index: {}]   ;;  %s2520_s1 = inlined_call_operand.hbm [shape: bf16[3,128,512], index: 1, kind: input, shape index: {}]   ;;  %s2521_s2 = inlined_call_operand.hbm [shape: f32[16,128], index: 2, kind: input, shape index: {}]   ;;  %s2522_s3 = inlined_call_operand.hbm [shape: f32[16,128], index: 3, kind: input, shape index: {}]   ;;  %s2523_s4 = inlined_call_operand.hbm [shape: f32[16,128], index: 4, kind: input, shape index: {}]   ;;  %s2524_s5 = inlined_call_operand.hbm [shape: f32[8,2,16,128], index: 5, kind: output, shape index: {}]  }
   0x1   :  { %2532 = sst [smem:[#allocation22_spill]] %s2520_s1 }
   0x2   :  { %2533 = sst [smem:[#allocation23_spill]] %s2521_s2 }
   0x3   :  { %2534 = sst [smem:[#allocation24_spill]] %s2522_s3 }
   0x4   :  { %2535 = sst [smem:[#allocation25_spill]] %s2523_s4 }
   0x5   :  { %10 = vsyncpa [#allocation5], 0 }
   0x6   :  { %12 = vsyncpa [#allocation5 + $0x1], 0 }
   0x7   :  { %13 = vsyncpa [#allocation8], 0 }
   0x8   :  { %14 = vsyncpa [#allocation11], 0 }
   0x9   :  { %15 = vsyncpa [#allocation6], 0 }
   0xa   :  { %17 = vsyncpa [#allocation6 + $0x1], 0  ;;  %s2227_s18 = smov 0   ;;  %s2229_s19 = smov 0  }
   0xb   :  { %s2231_s20 = smov 0   ;;  %s2233_s21 = smov 0  }
   0xc   :  { %s2235_s22 = smov 0   ;;  %s2237_s23 = smov 0  }
   0xd   :  { %s2239_s24 = smov 0   ;;  %s2241_s25 = smov 0  }
   0xe LB: > { %2536 = sst [smem:[#allocation18_spill]] %s2150_s18  ;;  %s1496_s26 = sadd.s32 4294967295, %s2178_s25   ;;  %s2178_s25 = sphi %s2241_s25, %s23_s25   ;;  %s2174_s24 = sphi %s2239_s24, %s2567_s24   ;;  %s2170_s23 = sphi %s2237_s23, %s2566_s23   ;;  %s2166_s22 = sphi %s2235_s22, %s2565_s22   ;;  %s2162_s21 = sphi %s2233_s21, %s2564_s21   ;;  %s2158_s20 = sphi %s2231_s20, %s2563_s20   ;;  %s2154_s19 = sphi %s2229_s19, %s2562_s19   ;;  %s2150_s18 = sphi %s2227_s18, %s2561_s18  }
   0xf   : > { %s1497_s27 = sadd.s32 4294967294, %s2178_s25   ;;  %p57_p0 = scmp.ne.s32.totalorder %s2154_s19, %s2150_s18 }
  0x10   : > { %p2271_p1 = scmp.eq.s32.totalorder %s1496_s26, 0  ;;  %p2275_p2 = scmp.eq.s32.totalorder %s1496_s26, 15 }
  0x11   : > { %p173_p3 = scmp.eq.s32.totalorder %s1497_s27, 15  ;;  %p1498_p5 = scmp.ge.s32.totalorder %s2178_s25, 1 }
  0x12   : > { %s2537_s28 = scalar_select %p2271_p1, 1, 0 }
  0x13   : > { %p2281_p4 = por %p2271_p1, %p57_p0  ;;  %p2286_p6 = por %p173_p3, %p57_p0 }
  0x14   : > { %p180_p7 = scmp.lt.s32.totalorder %s2178_s25, 17  ;;  %s2180_s8 = smov [#allocation7]  }
  0x15   : > { %s2540_s6 = scalar_select %p2286_p6, 1, 0 }
  0x16   : > { %p2291_p8 = pnand %p1498_p5, %p180_p7  ;;  %s192_s9 = sshll.u32 %s2180_s8, 4  ;;  %s193_s9 = int_to_ptr.vmem [resolvable:$true] %s192_s9 }
  0x17   : > { %2541 = sst [smem:[#allocation19_spill]] %s2540_s6  ;;  %s2181_s11 = smov [#allocation10]  }
  0x18   : > { %p1652_p9 = pneg %p2291_p8  ;;  %s218_s12 = sshll.u32 %s2181_s11, 4  ;;  %s219_s12 = int_to_ptr.vmem [resolvable:$true] %s218_s12 }
  0x19   : > { %s1953_s13 = scalar_lea.vmem %s193_s9, 12288  ;;  %p1961_p3 = scmp.lt.s32.totalorder %s193_s9, %s193_s9 }
  0x1a   : > { %p2299_p10 = pnand %p1652_p9, %p2271_p1  ;;  %p1954_p12 = scmp.ne.s32.totalorder %s193_s9, %s1953_s13 }
  0x1b   : > { %p1962_p5 = scmp.lt.s32.totalorder %s1953_s13, %s1953_s13 }
  0x1c   : > { %p1944_p11 = pneg %p2299_p10 }
  0x1d   : > { %p1963_p7 = por %p1962_p5, %p1961_p3 }
  0x1e   : > { %p1956_p13 = pnand %p1954_p12, %p1944_p11 }
  0x20   : > { %p1957_p0 = pneg %p1956_p13 }
  0x22   : > { %p1964_p6 = pnand %p1963_p7, %p1957_p0 }
  0x24   : > { %1967 = shalt.err (!%p1964_p6)
}
  0x25   : > { %s2182_s14 = smov 256   ;;  %s2183_s15 = smov 16  }
  0x26   : > { %s2544_s1 = sld [smem:[#allocation22_spill]]  ;;  %s2184_s26 = smov [#allocation9]  }
  0x27   : > { %s205_s27 = sshll.u32 %s2184_s26, 4  ;;  %s1979_s8 = scalar_lea.vmem %s219_s12, 256  ;;  %s206_s27 = int_to_ptr.vmem [resolvable:$true] %s205_s27 }
  0x28   : > { %p1980_p9 = scmp.ne.s32.totalorder %s219_s12, %s1979_s8  ;;  %p1987_p0 = scmp.lt.s32.totalorder %s219_s12, %s219_s12 }
  0x29   : > { %p1988_p6 = scmp.lt.s32.totalorder %s1979_s8, %s1979_s8 }
  0x2a   : > { %p1982_p12 = pnand %p1980_p9, %p1944_p11 }
  0x2b   : > { %p1989_p3 = por %p1988_p6, %p1987_p0 }
  0x2c   : > { %1655 = dma.hbm_to_vmem [thread:$0]  (!%p2299_p10), %s2544_s1, 12288, %s193_s9, [#allocation8], %s2182_s14, %s2182_s14, %s2183_s15  }
  0x2d   : > { %p1983_p13 = pneg %p1982_p12 }
  0x2f   : > { %p1990_p5 = pnand %p1989_p3, %p1983_p13 }
  0x31   : > { %1993 = shalt.err (!%p1990_p5)
}
  0x32   : > { %s2185_s11 = smov 128   ;;  %s2186_s13 = smov 8  }
  0x33   : > { %s2545_s3 = sld [smem:[#allocation24_spill]]  ;;  %s2005_s15 = scalar_lea.vmem %s206_s27, 256 }
  0x34   : > { %p2006_p7 = scmp.ne.s32.totalorder %s206_s27, %s2005_s15  ;;  %p2013_p1 = scmp.lt.s32.totalorder %s206_s27, %s206_s27 }
  0x35   : > { %p2014_p0 = scmp.lt.s32.totalorder %s2005_s15, %s2005_s15 }
  0x36   : > { %p2008_p9 = pnand %p2006_p7, %p1944_p11 }
  0x37   : > { %p2015_p13 = por %p2014_p0, %p2013_p1 }
  0x38   : > { %p2009_p12 = pneg %p2008_p9 }
  0x39   : > { %1661 = dma.hbm_to_vmem [thread:$0]  (!%p2299_p10), %s2545_s3, 256, %s219_s12, [#allocation11], %s2185_s11, %s2185_s11, %s2186_s13  }
  0x3a   : > { %p2016_p6 = pnand %p2015_p13, %p2009_p12 }
  0x3c   : > { %2019 = shalt.err (!%p2016_p6)
}
  0x3d   : > { %s2546_s2 = sld [smem:[#allocation23_spill]]  ;;  %s2187_s12 = smov [#allocation12]  }
  0x3e   : > { %s231_s26 = sshll.u32 %s2187_s12, 4  ;;  %s232_s26 = int_to_ptr.vmem [resolvable:$true] %s231_s26 }
  0x3f   : > { %s2031_s8 = scalar_lea.vmem %s232_s26, 256  ;;  %p2039_p9 = scmp.lt.s32.totalorder %s232_s26, %s232_s26 }
  0x40   : > { %p2032_p3 = scmp.ne.s32.totalorder %s232_s26, %s2031_s8  ;;  %p2040_p1 = scmp.lt.s32.totalorder %s2031_s8, %s2031_s8 }
  0x42   : > { %p2034_p5 = pnand %p2032_p3, %p1944_p11  ;;  %p2041_p12 = por %p2040_p1, %p2039_p9 }
  0x43   : > { %1658 = dma.hbm_to_vmem [thread:$0]  (!%p2299_p10), %s2546_s2, 256, %s206_s27, [#allocation8], %s2185_s11, %s2185_s11, %s2186_s13  }
  0x44   : > { %p2035_p7 = pneg %p2034_p5 }
  0x46   : > { %p2042_p0 = pnand %p2041_p12, %p2035_p7 }
  0x48   : > { %2045 = shalt.err (!%p2042_p0)
}
  0x49   : > { %s2547_s4 = sld [smem:[#allocation25_spill]]  ;;  %s32_s27 = sadd.s32 1, %s2170_s23 }
  0x4a   : > { %s35_s15 = sadd.s32 1, %s2174_s24  ;;  %p33_p11 = scmp.ge.s32.totalorder %s32_s27, 8 }
  0x4b   : > { %s44_s10 = sadd.s32 1, %s2158_s20  ;;  %p51_p13 = scmp.ne.s32.totalorder %s2158_s20, %s2154_s19 }
  0x4c   : > { %p52_p6 = scmp.eq.s32.totalorder %s2178_s25, 0  ;;  %s2569_s27 = smov (%p33_p11, %s32_s27), 0 }
  0x4d   : > { %2548 = sst [smem:[#allocation20_spill]] %s2569_s27  ;;  %s2571_s15 = smov (!%p33_p11, %s35_s15), %s2174_s24 }
  0x4e   : > { %s39_s16 = ssub.s32 %s2170_s23, %s2569_s27  ;;  %p2348_p3 = por %p52_p6, %p51_p13 }
  0x4f   : > { %1664 = dma.hbm_to_vmem [thread:$0]  (!%p2299_p10), %s2547_s4, 256, %s232_s26, [#allocation11], %s2185_s11, %s2185_s11, %s2186_s13  }
  0x50   : > { %p37_p10 = scmp.ge.s32.totalorder %s2571_s15, 2  ;;  %p2354_p5 = por %p2275_p2, %p51_p13 }
  0x51   : > { %p1677_p7 = scmp.lt.s32.totalorder %s2178_s25, 16  ;;  %s245_s13 = sand.u32 1, %s2158_s20  }
  0x52   : > { %s2550_s11 = scalar_select %p2354_p5, 1, 0 }
  0x53   : > { %s2573_s15 = smov (%p37_p10, %s2571_s15), 0  ;;  %s1504_s12 = sshll.u32 %s245_s13, 6 }
  0x54   : > { %2551 = sst [smem:[#allocation21_spill]] %s2550_s11  ;;  %s40_s26 = ssub.s32 %s2174_s24, %s2573_s15 }
  0x55   : > { %s41_s8 = sor.u32 %s40_s26, %s39_s16  ;;  %s1505_s9 = sshll.u32 %s2174_s24, 3 }
  0x56   : > { %p42_p9 = scmp.eq.s32.totalorder %s41_s8, 0  ;;  %s1506_s14 = sshll.u32 %s2170_s23, 4 }
  0x57   : > { %s255_s1 = sadd.s32 %s1506_s14, %s1505_s9  ;;  %s249_s2 = scalar_lea.vmem [#allocation4], %s1504_s12 }
  0x58   : > { %s258_s29 = sshll.u32 %s249_s2, 4  ;;  %s1507_s4 = sshll.u32 %s255_s1, 7  ;;  %s259_s29 = int_to_ptr.vmem [resolvable:$true] %s258_s29 }
  0x59   : > { %s2367_s3 = scalar_select %p42_p9, %s2158_s20, %s44_s10  }
  0x5a   : > { %s257_s18 = scalar_lea.hbm %s2519_s0, %s1507_s4  ;;  %p2376_p2 = pnand %p1677_p7, %p2348_p3 }
  0x5b   : > { %s246_s16 = scalar_lea.sflag [#allocation5], %s245_s13  ;;  %s2059_s12 = scalar_lea.vmem %s259_s29, 1024 }
  0x5c   : > { %p2048_p1 = pneg %p2376_p2  ;;  %p2060_p12 = scmp.ne.s32.totalorder %s259_s29, %s2059_s12 }
  0x5d   : > { %s2188_s1 = smov [#allocation4]  }
  0x5e   : > { %p2062_p0 = pnand %p2060_p12, %p2048_p1  ;;  %s2064_s2 = sshll.u32 %s2188_s1, 4  ;;  %s2065_s2 = int_to_ptr.vmem [resolvable:$false] %s2064_s2 }
  0x5f   : > { %s2066_s10 = scalar_lea.vmem %s2065_s2, 2048  ;;  %p2067_p13 = scmp.lt.s32.totalorder %s259_s29, %s2065_s2 }
  0x60   : > { %p2063_p11 = pneg %p2062_p0  ;;  %p2068_p6 = scmp.lt.s32.totalorder %s2066_s10, %s2059_s12 }
  0x62   : > { %p2069_p10 = por %p2068_p6, %p2067_p13 }
  0x64   : > { %p2070_p9 = pnand %p2069_p10, %p2063_p11 }
  0x66   : > { %2073 = shalt.err (!%p2070_p9)
}
  0x67   : > { %s2189_s4 = smov 512   ;;  %s2190_s6 = smov 32  }
  0x68   : > { %1668 = dma.hbm_to_vmem [thread:$0]  (!%p2376_p2), %s257_s18, 1024, %s259_s29, %s246_s16, %s2189_s4, %s2189_s4, %s2190_s6  }
  0x69   : > { %270 = sbr.rel (%p2291_p8) target bundleno = 522 (0x20a), region = 40  ;;  %s2387_s27 = sand.u32 (!%p2291_p8), 1, %s2154_s19  }
  0x6a   : > { %s1509_s17 = sshll.u32 (!%p2291_p8), %s2387_s27, 6  ;;  %s273_s13 = scalar_lea.sflag (!%p2291_p8), [#allocation5], %s2387_s27 }
  0x6b   : > { %s2391_s26 = scalar_lea.vmem (!%p2291_p8), [#allocation4], %s1509_s17 }
  0x6e   : > { %2133 = dma.done.wait (%p2281_p4), %s273_s13, 1024  }
  0x6f   : > { %2135 = vsyncadd (%p2281_p4), %s273_s13, 4294966272  ;;  %p2553_p3 = scmp.ne.s32.totalorder %s2537_s28, 0 }
  0x71   : > { %2137 = dma.done.wait (%p2553_p3), [#allocation8], 12544  }
  0x72   : > { %2139 = vsyncadd (%p2553_p3), [#allocation8], 4294954752 }
  0x73   : > { %2141 = dma.done.wait (%p2553_p3), [#allocation11], 512  }
  0x74   : > { %2143 = vsyncadd (%p2553_p3), [#allocation11], 4294966784  ;;  %s1514_s18 = sshll.u32 %s2387_s27, 4  ;;  %p1515_p8 = scmp.ne.s32.totalorder %s2162_s21, 0 }
  0x75   : > { %s2406_s7 = scalar_lea.vmem [#allocation13], %s1514_s18 }
  0x76   : > { %323 = sbr.rel (%p1515_p8) target bundleno = 127 (0x7f), region = 64 }
  0x7b   : > { %v2191_v0 = vmov 0   ;;  %v2192_v1 = vmov 0.0  }
  0x7c   : > { %324 = vst [vmem:[#allocation2] sm:$0xf] %v2191_v0  ;;  %325 = vst [vmem:[#allocation2 + $0x4] sm:$0xf] %v2191_v0 }
  0x7d   : > { %326 = vst [vmem:[#allocation2 + $0x8] sm:$0x1] %v2191_v0  ;;  %327 = vst [vmem:[#allocation3] sm:$0xff] %v2192_v1 }
  0x7e   : > { %328 = vst [vmem:[#allocation3 + $0x8] sm:$0xff] %v2192_v1 }
  0x7f PF: > { %v1762_v2 = vld [vmem:[#allocation7 + $0xe4] ss:$16 sps:$4 sm:$0xff]   ;;  %v1764_v3 = vld [vmem:[#allocation7 + $0xec] ss:$16 sps:$4 sm:$0xff]   ;;  %v2193_v4 = vmov 0   ;;  %vm980_vm1 = vcmask 1046528  }
  0x80   : > { %569 = vmatprep.mubr.bf16.mxu0 %v2193_v4  ;;  %612 = vmatprep.mubr.bf16.mxu1 %v2193_v4  ;;  %v1766_v5 = vld [vmem:[#allocation7 + $0xe0] ss:$16 sps:$4 sm:$0xff]   ;;  %v1767_v6 = vld [vmem:[#allocation7 + $0xe8] ss:$16 sps:$4 sm:$0xff]   ;;  %v1768_v7 = vld [vmem:[#allocation7 + $0xc4] ss:$16 sps:$4 sm:$0xff]  }
  0x81   : > { %537 = vmatprep.subr.bf16.mxu0 %v1762_v2  ;;  %580 = vmatprep.subr.bf16.mxu1 %v1764_v3  ;;  %v1770_v8 = vld [vmem:[#allocation7 + $0xcc] ss:$16 sps:$4 sm:$0xff]   ;;  %v1772_v9 = vld [vmem:[#allocation7 + $0xc0] ss:$16 sps:$4 sm:$0xff]   ;;  %v1773_v10 = vld [vmem:[#allocation7 + $0xc8] ss:$16 sps:$4 sm:$0xff]  }
  0x82   : > { %538 = vmatpush1.bf16.msra.mxu0 %v1766_v5  ;;  %581 = vmatpush1.bf16.msra.mxu1 %v1767_v6  ;;  %v1774_v11 = vld [vmem:[#allocation7 + $0xa4] ss:$16 sps:$4 sm:$0xff]   ;;  %v1776_v12 = vld [vmem:[#allocation7 + $0xac] ss:$16 sps:$4 sm:$0xff]   ;;  %v1778_v13 = vld [vmem:[#allocation7 + $0xa0] ss:$16 sps:$4 sm:$0xff]  }
  0x83   : > { %539 = vmatprep.subr.bf16.mxu0 %v1768_v7  ;;  %582 = vmatprep.subr.bf16.mxu1 %v1770_v8  ;;  %v1779_v14 = vld [vmem:[#allocation7 + $0xa8] ss:$16 sps:$4 sm:$0xff]   ;;  %v1780_v15 = vld [vmem:[#allocation7 + $0x84] ss:$16 sps:$4 sm:$0xff]   ;;  %v1782_v16 = vld [vmem:[#allocation7 + $0x8c] ss:$16 sps:$4 sm:$0xff]  }
  0x84   : > { %v1784_v17 = vld [vmem:[#allocation7 + $0x80] ss:$16 sps:$4 sm:$0xff]   ;;  %v1785_v18 = vld [vmem:[#allocation7 + $0x88] ss:$16 sps:$4 sm:$0xff]   ;;  %v1786_v19 = vld [vmem:[#allocation7 + $0x64] ss:$16 sps:$4 sm:$0xff]  }
  0x85   : > { %v1788_v20 = vld [vmem:[#allocation7 + $0x6c] ss:$16 sps:$4 sm:$0xff]   ;;  %v1790_v21 = vld [vmem:[#allocation7 + $0x60] ss:$16 sps:$4 sm:$0xff]   ;;  %v1791_v22 = vld [vmem:[#allocation7 + $0x68] ss:$16 sps:$4 sm:$0xff]  }
  0x86   : > { %540 = vmatpush1.bf16.msra.mxu0 %v1772_v9  ;;  %583 = vmatpush1.bf16.msra.mxu1 %v1773_v10  ;;  %v1792_v23 = vld [vmem:[#allocation7 + $0x44] ss:$16 sps:$4 sm:$0xff]   ;;  %v1794_v24 = vld [vmem:[#allocation7 + $0x4c] ss:$16 sps:$4 sm:$0xff]   ;;  %v1796_v25 = vld [vmem:[#allocation7 + $0x40] ss:$16 sps:$4 sm:$0xff]  }
  0x87   : > { %541 = vmatprep.subr.bf16.mxu0 %v1774_v11  ;;  %584 = vmatprep.subr.bf16.mxu1 %v1776_v12  ;;  %v1797_v26 = vld [vmem:[#allocation7 + $0x48] ss:$16 sps:$4 sm:$0xff]   ;;  %v1798_v27 = vld [vmem:[#allocation7 + $0x24] ss:$16 sps:$4 sm:$0xff]   ;;  %v1800_v28 = vld [vmem:[#allocation7 + $0x2c] ss:$16 sps:$4 sm:$0xff]  }
  0x88   : > { %v1802_v29 = vld [vmem:[#allocation7 + $0x20] ss:$16 sps:$4 sm:$0xff]   ;;  %v1803_v30 = vld [vmem:[#allocation7 + $0x28] ss:$16 sps:$4 sm:$0xff]   ;;  %v1804_v31 = vld [vmem:[#allocation7 + $0x4] ss:$16 sps:$4 sm:$0xff]  }
  0x89   : > { %v1806_v32 = vld [vmem:[#allocation7 + $0xc] ss:$16 sps:$4 sm:$0xff]   ;;  %v1808_v33 = vld [vmem:[#allocation7] ss:$16 sps:$4 sm:$0xff]   ;;  %v1809_v34 = vld [vmem:[#allocation7 + $0x8] ss:$16 sps:$4 sm:$0xff]  }
  0x8a   : > { %542 = vmatpush1.bf16.msra.mxu0 %v1778_v13  ;;  %585 = vmatpush1.bf16.msra.mxu1 %v1779_v14  ;;  %v1813_v35 = vld [vmem:[#allocation7 + $0x1e4] ss:$16 sps:$4 sm:$0xff]   ;;  %v1816_v36 = vld [vmem:[#allocation7 + $0x1ec] ss:$16 sps:$4 sm:$0xff]   ;;  %v1811_v38 = vld [vmem:[#allocation7 + $0x1e0] ss:$16 sps:$4 sm:$0xff]  }
  0x8b   : > { %543 = vmatprep.subr.bf16.mxu0 %v1780_v15  ;;  %586 = vmatprep.subr.bf16.mxu1 %v1782_v16  ;;  %v1810_v37 = vld [vmem:[#allocation2] sm:$0xff]   ;;  %v1822_v41 = vld [vmem:[#allocation7 + $0x1cc] ss:$16 sps:$4 sm:$0xff]   ;;  %v1817_v42 = vld [vmem:[#allocation7 + $0x1c0] ss:$16 sps:$4 sm:$0xff]   ;;  %s1625_s28 = sshll.u32 %s2166_s22, 1 }
  0x8c   : > { %v1814_v39 = vld [vmem:[#allocation7 + $0x1e8] ss:$16 sps:$4 sm:$0xff]   ;;  %v1819_v40 = vld [vmem:[#allocation7 + $0x1c4] ss:$16 sps:$4 sm:$0xff]   ;;  %v1828_v45 = vld [vmem:[#allocation7 + $0x1ac] ss:$16 sps:$4 sm:$0xff]  }
  0x8d   : > { %v1820_v43 = vld [vmem:[#allocation7 + $0x1c8] ss:$16 sps:$4 sm:$0xff]   ;;  %v1825_v44 = vld [vmem:[#allocation7 + $0x1a4] ss:$16 sps:$4 sm:$0xff]   ;;  %v1823_v46 = vld [vmem:[#allocation7 + $0x1a0] ss:$16 sps:$4 sm:$0xff]  }
  0x8e   : > { %544 = vmatpush1.bf16.msra.mxu0 %v1784_v17  ;;  %587 = vmatpush1.bf16.msra.mxu1 %v1785_v18  ;;  %v1826_v47 = vld [vmem:[#allocation7 + $0x1a8] ss:$16 sps:$4 sm:$0xff]   ;;  %v1831_v48 = vld [vmem:[#allocation7 + $0x184] ss:$16 sps:$4 sm:$0xff]   ;;  %v1834_v49 = vld [vmem:[#allocation7 + $0x18c] ss:$16 sps:$4 sm:$0xff]  }
  0x8f   : > { %545 = vmatprep.subr.bf16.mxu0 %v1786_v19  ;;  %588 = vmatprep.subr.bf16.mxu1 %v1788_v20  ;;  %v1829_v50 = vld [vmem:[#allocation7 + $0x180] ss:$16 sps:$4 sm:$0xff]   ;;  %v1832_v51 = vld [vmem:[#allocation7 + $0x188] ss:$16 sps:$4 sm:$0xff]   ;;  %v1837_v52 = vld [vmem:[#allocation7 + $0x164] ss:$16 sps:$4 sm:$0xff]  }
  0x90   : > { %v1840_v53 = vld [vmem:[#allocation7 + $0x16c] ss:$16 sps:$4 sm:$0xff]   ;;  %v631_v54 = vld [vmem:[#allocation2] sm:$0xf]  ;;  %v2413_v55 = vld [vmem:[#allocation2 + $0x4] sm:$0xf] }
  0x91   : > { %v1835_v56 = vld [vmem:[#allocation7 + $0x160] ss:$16 sps:$4 sm:$0xff]   ;;  %v1838_v57 = vld [vmem:[#allocation7 + $0x168] ss:$16 sps:$4 sm:$0xff]   ;;  %v1843_v58 = vld [vmem:[#allocation7 + $0x144] ss:$16 sps:$4 sm:$0xff]   ;;  %v1549_v59 = vcombine.low %v631_v54, %v2413_v55 }
  0x92   : > { %546 = vmatpush1.bf16.msra.mxu0 %v1790_v21  ;;  %589 = vmatpush1.bf16.msra.mxu1 %v1791_v22  ;;  %v1846_v60 = vld [vmem:[#allocation7 + $0x14c] ss:$16 sps:$4 sm:$0xff]   ;;  %v1841_v61 = vld [vmem:[#allocation7 + $0x140] ss:$16 sps:$4 sm:$0xff]   ;;  %v1844_v62 = vld [vmem:[#allocation7 + $0x148] ss:$16 sps:$4 sm:$0xff]  }
  0x93   : > { %547 = vmatprep.subr.bf16.mxu0 %v1792_v23  ;;  %590 = vmatprep.subr.bf16.mxu1 %v1794_v24  ;;  %v1849_v63 = vld [vmem:[#allocation7 + $0x124] ss:$16 sps:$4 sm:$0xff]   ;;  %v2416_v0 = vld [vmem:[#allocation2 + $0x8] ss:$0 sps:$4 sm:$0x11]   ;;  %v679_v1 = vshll.u32 %v1549_v59, 16 }
  0x94   : > { %v1852_v2 = vld [vmem:[#allocation7 + $0x12c] ss:$16 sps:$4 sm:$0xff]   ;;  %v1847_v3 = vld [vmem:[#allocation7 + $0x120] ss:$16 sps:$4 sm:$0xff]   ;;  %v1850_v5 = vld [vmem:[#allocation7 + $0x128] ss:$16 sps:$4 sm:$0xff]  }
  0x95   : > { %v1855_v6 = vld [vmem:[#allocation7 + $0x104] ss:$16 sps:$4 sm:$0xff]   ;;  %v677_v7 = vshrl.u32 %v1549_v59, 16  ;;  %v681_v8 = vrot.slane %v679_v1, 1  ;;  %v684_v9 = vshll.u32 %v2416_v0, 16  ;;  %s1626_s30 = sshll.u32 %s2162_s21, 2 }
  0x96   : > { %548 = vmatpush1.bf16.msra.mxu0 %v1796_v25  ;;  %591 = vmatpush1.bf16.msra.mxu1 %v1797_v26  ;;  %v1858_v10 = vld [vmem:[#allocation7 + $0x10c] ss:$16 sps:$4 sm:$0xff]   ;;  %v1853_v11 = vld [vmem:[#allocation7 + $0x100] ss:$16 sps:$4 sm:$0xff]   ;;  %v1856_v12 = vld [vmem:[#allocation7 + $0x108] ss:$16 sps:$4 sm:$0xff]   ;;  %s1365_s11 = sadd.s32 %s1626_s30, %s1625_s28 }
  0x97   : > { %549 = vmatprep.subr.bf16.mxu0 %v1798_v27  ;;  %592 = vmatprep.subr.bf16.mxu1 %v1800_v28  ;;  %v682_v13 = vor.u32 %v681_v8, %v677_v7  ;;  %v686_v14 = vrot.slane %v684_v9, 1  ;;  %v1863_v15 = vld [vmem:[#allocation7 + $0x2e4] ss:$16 sps:$4 sm:$0xff]   ;;  %vm675_vm0 = vsmask.f32 7424  ;;  %s1627_s8 = sshll.u32 %s1365_s11, 7 }
  0x98   : > { %v1866_v16 = vld [vmem:[#allocation7 + $0x2ec] ss:$16 sps:$4 sm:$0xff]   ;;  %v1861_v17 = vld [vmem:[#allocation7 + $0x2e0] ss:$16 sps:$4 sm:$0xff]   ;;  %v1864_v18 = vld [vmem:[#allocation7 + $0x2e8] ss:$16 sps:$4 sm:$0xff]   ;;  %s2454_s16 = scalar_lea.hbm %s2524_s5, %s1627_s8 }
  0x99   : > { %v687_v19 = vsel %vm675_vm0, %v682_v13, %v686_v14  ;;  %v1869_v20 = vld [vmem:[#allocation7 + $0x2c4] ss:$16 sps:$4 sm:$0xff]   ;;  %v1872_v21 = vld [vmem:[#allocation7 + $0x2cc] ss:$16 sps:$4 sm:$0xff]   ;;  %v1867_v22 = vld [vmem:[#allocation7 + $0x2c0] ss:$16 sps:$4 sm:$0xff]  }
  0x9a   : > { %550 = vmatpush1.bf16.msra.mxu0 %v1802_v29  ;;  %593 = vmatpush1.bf16.msra.mxu1 %v1803_v30  ;;  %v1870_v23 = vld [vmem:[#allocation7 + $0x2c8] ss:$16 sps:$4 sm:$0xff]   ;;  %v1875_v24 = vld [vmem:[#allocation7 + $0x2a4] ss:$16 sps:$4 sm:$0xff]   ;;  %v1878_v25 = vld [vmem:[#allocation7 + $0x2ac] ss:$16 sps:$4 sm:$0xff]  }
  0x9b   : > { %551 = vmatprep.subr.bf16.mxu0 %v1804_v31  ;;  %594 = vmatprep.subr.bf16.mxu1 %v1806_v32  ;;  %v1873_v26 = vld [vmem:[#allocation7 + $0x2a0] ss:$16 sps:$4 sm:$0xff]   ;;  %v1876_v27 = vld [vmem:[#allocation7 + $0x2a8] ss:$16 sps:$4 sm:$0xff]   ;;  %v1881_v28 = vld [vmem:[#allocation7 + $0x284] ss:$16 sps:$4 sm:$0xff]  }
  0x9c   : > { %v1884_v29 = vld [vmem:[#allocation7 + $0x28c] ss:$16 sps:$4 sm:$0xff]   ;;  %v1879_v30 = vld [vmem:[#allocation7 + $0x280] ss:$16 sps:$4 sm:$0xff]   ;;  %v1882_v31 = vld [vmem:[#allocation7 + $0x288] ss:$16 sps:$4 sm:$0xff]  }
  0x9d   : > { %v1887_v32 = vld [vmem:[#allocation7 + $0x264] ss:$16 sps:$4 sm:$0xff]   ;;  %v1242_v13 = vld [vmem:[#allocation9 + $0x8] sm:$0xff]  ;;  %s1368_s9 = sshll.u32 %s2406_s7, 4  ;;  %vm1338_vm2 = vcmask 1043456   ;;  %s1353_s22 = scalar_lea.sflag [#allocation6], %s2387_s27  ;;  %s2456_s9 = int_to_ptr.vmem [resolvable:$true] %s1368_s9 }
  0x9e   : > { %552 = vmatpush1.bf16.msra.mxu0 %v1808_v33  ;;  %595 = vmatpush1.bf16.msra.mxu1 %v1809_v34  ;;  %v1890_v33 = vld [vmem:[#allocation7 + $0x26c] ss:$16 sps:$4 sm:$0xff]   ;;  %v1885_v34 = vld [vmem:[#allocation7 + $0x260] ss:$16 sps:$4 sm:$0xff]   ;;  %vm1339_vm3 = vsmask.f32 7938 }
  0x9f   : > { %849 = vmatprep.subr.bf16.mxu0 %v1813_v35  ;;  %892 = vmatprep.subr.bf16.mxu1 %v1816_v36  ;;  %v1893_v35 = vld [vmem:[#allocation7 + $0x244] ss:$16 sps:$4 sm:$0xff]   ;;  %v1896_v36 = vld [vmem:[#allocation7 + $0x24c] ss:$16 sps:$4 sm:$0xff]   ;;  %vm1315_vm4 = vsmask.f32 256  ;;  %vm2459_vm6 = vmand %vm1338_vm2, %vm1339_vm3 }
  0xa0   : > { %v1241_v1 = vld [vmem:[#allocation9] sm:$0xff]  ;;  %v1259_v7 = vld [vmem:[#allocation10] sm:$0xff]  ;;  %v334_v14 = vld [vmem:[%s2391_s26 + $0x28] sm:$0xff]  ;;  %vm1316_vm5 = vsmask.f32 4368  ;;  %s2074_s12 = scalar_lea.vmem %s2456_s9, 256 }
  0xa1   : > { %570 = vmatmul.mubr.bf16.vlgmr.msra.gmra.mxu0 %v1810_v37  ;;  %613 = vmatmul.mubr.bf16.vlgmr.msra.gmra.mxu1 %v1810_v37  ;;  %v1891_v37 = vld [vmem:[#allocation7 + $0x240] ss:$16 sps:$4 sm:$0xff]   ;;  %p2075_p4 = scmp.ne.s32.totalorder %s2456_s9, %s2074_s12  ;;  %s2194_s1 = smov [#allocation13]  }
  0xa2   : > { %850 = vmatpush1.bf16.msra.mxu0 %v1811_v38  ;;  %893 = vmatpush1.bf16.msra.mxu1 %v1814_v39  ;;  %v1894_v38 = vld [vmem:[#allocation7 + $0x248] ss:$16 sps:$4 sm:$0xff]   ;;  %v1899_v39 = vld [vmem:[#allocation7 + $0x224] ss:$16 sps:$4 sm:$0xff]   ;;  %s2078_s2 = sshll.u32 %s2194_s1, 4  ;;  %s2079_s2 = int_to_ptr.vmem [resolvable:$false] %s2078_s2 }
  0xa3   : > { %851 = vmatprep.subr.bf16.mxu0 %v1819_v40  ;;  %894 = vmatprep.subr.bf16.mxu1 %v1822_v41  ;;  %v1902_v40 = vld [vmem:[#allocation7 + $0x22c] ss:$16 sps:$4 sm:$0xff]   ;;  %v943_v41 = vld [vmem:[#allocation2] sm:$0xe]  ;;  %p2076_p7 = pnand %p2075_p4, %p2354_p5  ;;  %s2080_s10 = scalar_lea.vmem %s2079_s2, 512 }
  0xa4   : > { %881 = vmatprep.mubr.bf16.mxu0 %v2193_v4  ;;  %924 = vmatprep.mubr.bf16.mxu1 %v2193_v4  ;;  %p2081_p1 = scmp.lt.s32.totalorder %s2456_s9, %s2079_s2  ;;  %p2082_p12 = scmp.lt.s32.totalorder %s2080_s10, %s2074_s12 }
  0xa5   : > { %p2077_p2 = pneg %p2076_p7 }
  0xa6   : > { %852 = vmatpush1.bf16.msra.mxu0 %v1817_v42  ;;  %895 = vmatpush1.bf16.msra.mxu1 %v1820_v43  ;;  %v1897_v42 = vld [vmem:[#allocation7 + $0x220] ss:$16 sps:$4 sm:$0xff]   ;;  %v1900_v43 = vld [vmem:[#allocation7 + $0x228] ss:$16 sps:$4 sm:$0xff]   ;;  %p2083_p0 = por %p2082_p12, %p2081_p1 }
  0xa7   : > { %853 = vmatprep.subr.bf16.mxu0 %v1825_v44  ;;  %896 = vmatprep.subr.bf16.mxu1 %v1828_v45  ;;  %v1583_v44 = vcombine.low %v943_v41, %v2413_v55  ;;  %v1905_v45 = vld [vmem:[#allocation7 + $0x204] ss:$16 sps:$4 sm:$0xff]  }
  0xa8   : > { %p2084_p11 = pnand %p2083_p0, %p2077_p2 }
  0xaa   : > { %854 = vmatpush1.bf16.msra.mxu0 %v1823_v46  ;;  %897 = vmatpush1.bf16.msra.mxu1 %v1826_v47  ;;  %v1908_v46 = vld [vmem:[#allocation7 + $0x20c] ss:$16 sps:$4 sm:$0xff]   ;;  %v1903_v47 = vld [vmem:[#allocation7 + $0x200] ss:$16 sps:$4 sm:$0xff]  }
  0xab   : > { %855 = vmatprep.subr.bf16.mxu0 %v1831_v48  ;;  %898 = vmatprep.subr.bf16.mxu1 %v1834_v49  ;;  %v1906_v48 = vld [vmem:[#allocation7 + $0x208] ss:$16 sps:$4 sm:$0xff]   ;;  %v981_v49 = vrot.slane %v1583_v44, 1 }
  0xae   : > { %856 = vmatpush1.bf16.msra.mxu0 %v1829_v50  ;;  %899 = vmatpush1.bf16.msra.mxu1 %v1832_v51  ;;  %v982_v50 = vrot.slane %v2416_v0, 1  ;;  %v2427_v0 = vld [vmem:[#allocation3] sm:$0xff] }
  0xaf   : > { %857 = vmatprep.subr.bf16.mxu0 %v1837_v52  ;;  %900 = vmatprep.subr.bf16.mxu1 %v1840_v53 }
  0xb0   : > { %v983_v51 = vsel %vm980_vm1, %v981_v49, %v982_v50 }
  0xb2   : > { %858 = vmatpush1.bf16.msra.mxu0 %v1835_v56  ;;  %901 = vmatpush1.bf16.msra.mxu1 %v1838_v57 }
  0xb3   : > { %859 = vmatprep.subr.bf16.mxu0 %v1843_v58  ;;  %902 = vmatprep.subr.bf16.mxu1 %v1846_v60 }
  0xb6   : > { %860 = vmatpush1.bf16.msra.mxu0 %v1841_v61  ;;  %903 = vmatpush1.bf16.msra.mxu1 %v1844_v62  ;;  %v329_v61 = vld [vmem:[%s2391_s26] sm:$0xff] }
  0xb7   : > { %861 = vmatprep.subr.bf16.mxu0 %v1849_v63  ;;  %904 = vmatprep.subr.bf16.mxu1 %v1852_v2  ;;  %v330_v63 = vld [vmem:[%s2391_s26 + $0x8] sm:$0xff] }
  0xba   : > { %862 = vmatpush1.bf16.msra.mxu0 %v1847_v3  ;;  %905 = vmatpush1.bf16.msra.mxu1 %v1850_v5  ;;  %v333_v5 = vld [vmem:[%s2391_s26 + $0x20] sm:$0xff] }
  0xbb   : > { %863 = vmatprep.subr.bf16.mxu0 %v1855_v6  ;;  %906 = vmatprep.subr.bf16.mxu1 %v1858_v10 }
  0xbe   : > { %864 = vmatpush1.bf16.msra.mxu0 %v1853_v11  ;;  %907 = vmatpush1.bf16.msra.mxu1 %v1856_v12  ;;  %v1243_v11 = vmul.f32 %v1241_v1, %v2427_v0  ;;  %v2433_v12 = vld [vmem:[#allocation3 + $0x8] sm:$0xff] }
  0xbf   : > { %1145 = vmatprep.subr.bf16.mxu0 %v1863_v15  ;;  %1188 = vmatprep.subr.bf16.mxu1 %v1866_v16 }
  0xc1   : > { %882 = vmatmul.mubr.bf16.vlgmr.msra.gmra.mxu0 %v687_v19  ;;  %925 = vmatmul.mubr.bf16.vlgmr.msra.gmra.mxu1 %v687_v19  ;;  %v1261_v19 = vmul.f32 %v1259_v7, %v2427_v0 }
  0xc2   : > { %1146 = vmatpush1.bf16.msra.mxu0 %v1861_v17  ;;  %1189 = vmatpush1.bf16.msra.mxu1 %v1864_v18 }
  0xc3   : > { %1147 = vmatprep.subr.bf16.mxu0 %v1869_v20  ;;  %1190 = vmatprep.subr.bf16.mxu1 %v1872_v21  ;;  %v1260_v20 = vld [vmem:[#allocation10 + $0x8] sm:$0xff] }
  0xc4   : > { %1177 = vmatprep.mubr.bf16.mxu0 %v2193_v4  ;;  %1220 = vmatprep.mubr.bf16.mxu1 %v2193_v4  ;;  %v1888_v4 = vld [vmem:[#allocation7 + $0x268] ss:$16 sps:$4 sm:$0xff]  }
  0xc6   : > { %1148 = vmatpush1.bf16.msra.mxu0 %v1867_v22  ;;  %1191 = vmatpush1.bf16.msra.mxu1 %v1870_v23  ;;  %v1244_v22 = vmul.f32 %v1242_v13, %v2433_v12 }
  0xc7   : > { %1149 = vmatprep.subr.bf16.mxu0 %v1875_v24  ;;  %1192 = vmatprep.subr.bf16.mxu1 %v1878_v25 }
  0xca   : > { %1150 = vmatpush1.bf16.msra.mxu0 %v1873_v26  ;;  %1193 = vmatpush1.bf16.msra.mxu1 %v1876_v27 }
  0xcb   : > { %1151 = vmatprep.subr.bf16.mxu0 %v1881_v28  ;;  %1194 = vmatprep.subr.bf16.mxu1 %v1884_v29  ;;  %v1262_v29 = vmul.f32 %v1260_v20, %v2433_v12 }
  0xce   : > { %1152 = vmatpush1.bf16.msra.mxu0 %v1879_v30  ;;  %1195 = vmatpush1.bf16.msra.mxu1 %v1882_v31 }
  0xcf   : > { %1153 = vmatprep.subr.bf16.mxu0 %v1887_v32  ;;  %1196 = vmatprep.subr.bf16.mxu1 %v1890_v33 }
  0xd2   : > { %1154 = vmatpush1.bf16.msra.mxu0 %v1885_v34  ;;  %1197 = vmatpush1.bf16.msra.mxu1 %v1888_v4 }
  0xd3   : > { %1155 = vmatprep.subr.bf16.mxu0 %v1893_v35  ;;  %1198 = vmatprep.subr.bf16.mxu1 %v1896_v36 }
  0xd6   : > { %1156 = vmatpush1.bf16.msra.mxu0 %v1891_v37  ;;  %1199 = vmatpush1.bf16.msra.mxu1 %v1894_v38 }
  0xd7   : > { %1157 = vmatprep.subr.bf16.mxu0 %v1899_v39  ;;  %1200 = vmatprep.subr.bf16.mxu1 %v1902_v40 }
  0xda   : > { %1158 = vmatpush1.bf16.msra.mxu0 %v1897_v42  ;;  %1201 = vmatpush1.bf16.msra.mxu1 %v1900_v43  ;;  %v331_v42 = vld [vmem:[%s2391_s26 + $0x10] sm:$0xff] }
  0xdb   : > { %1159 = vmatprep.subr.bf16.mxu0 %v1905_v45  ;;  %1202 = vmatprep.subr.bf16.mxu1 %v1908_v46  ;;  %v335_v45 = vld [vmem:[%s2391_s26 + $0x30] sm:$0xff] }
  0xde   : > { %1160 = vmatpush1.bf16.msra.mxu0 %v1903_v47  ;;  %1203 = vmatpush1.bf16.msra.mxu1 %v1906_v48 }
  0xe1   : > { %1178 = vmatmul.mubr.bf16.vlgmr.msra.gmra.mxu0 %v983_v51  ;;  %1221 = vmatmul.mubr.bf16.vlgmr.msra.gmra.mxu1 %v983_v51 }
 0x161   : > { %v571_v52 = vpop.f32.mrf.mxu0  ;;  %v614_v56 = vpop.f32.mrf.mxu1 }
 0x162   : > { %v623_v2 = vadd.f32 %v571_v52, %v329_v61  ;;  %v625_v44 = vadd.f32 %v614_v56, %v331_v42  ;;  %v1341_v42 = vld [vmem:[#allocation2] sm:$0xf] }
 0x163   : > { %v573_v53 = vpop.f32.mrf.mxu0  ;;  %v2423_v58 = vpop.f32.mrf.mxu1 }
 0x164   : > { %v624_v8 = vadd.f32 %v573_v53, %v330_v63  ;;  %v332_v63 = vld [vmem:[%s2391_s26 + $0x18] sm:$0xff] }
 0x165   : > { %v575_v54 = vpop.f32.mrf.mxu0  ;;  %v618_v60 = vpop.f32.mrf.mxu1 }
 0x166   : > { %v627_v16 = vadd.f32 %v575_v54, %v333_v5  ;;  %v629_v49 = vadd.f32 %v618_v60, %v335_v45  ;;  %v626_v5 = vadd.f32 %v2423_v58, %v332_v63  ;;  %v1286_v58 = vld [vmem:[#allocation12 + $0x8] sm:$0xff] }
 0x167   : > { %v577_v55 = vpop.f32.mrf.mxu0  ;;  %v2429_v3 = vpop.f32.mrf.mxu1 }
 0x168   : > { %v628_v23 = vadd.f32 %v577_v55, %v334_v14 }
 0x181   : > { %v883_v57 = vpop.f32.mrf.mxu0  ;;  %v926_v10 = vpop.f32.mrf.mxu1 }
 0x182   : > { %v935_v9 = vadd.f32 %v883_v57, %v623_v2  ;;  %v937_v47 = vadd.f32 %v926_v10, %v625_v44  ;;  %v1285_v10 = vld [vmem:[#allocation12] sm:$0xff] }
 0x183   : > { %v885_v59 = vpop.f32.mrf.mxu0  ;;  %v928_v24 = vpop.f32.mrf.mxu1 }
 0x184   : > { %v936_v17 = vadd.f32 %v885_v59, %v624_v8  ;;  %v938_v13 = vadd.f32 %v928_v24, %v626_v5 }
 0x185   : > { %v887_v62 = vpop.f32.mrf.mxu0  ;;  %v930_v4 = vpop.f32.mrf.mxu1 }
 0x186   : > { %v939_v25 = vadd.f32 %v887_v62, %v627_v16  ;;  %v941_v54 = vadd.f32 %v930_v4, %v629_v49 }
 0x187   : > { %v889_v6 = vpop.f32.mrf.mxu0  ;;  %v932_v40 = vpop.f32.mrf.mxu1 }
 0x188   : > { %v940_v30 = vadd.f32 %v889_v6, %v628_v23  ;;  %v336_v6 = vld [vmem:[%s2391_s26 + $0x38] sm:$0xff] }
 0x189   : > { %v630_v16 = vadd.f32 %v2429_v3, %v336_v6 }
 0x1a1   : > { %v1179_v15 = vpop.f32.mrf.mxu0  ;;  %v1222_v43 = vpop.f32.mrf.mxu1 }
 0x1a2   : > { %v1231_v18 = vadd.f32 %v1179_v15, %v935_v9  ;;  %v1233_v50 = vadd.f32 %v1222_v43, %v937_v47 }
 0x1a3   : > { %v1181_v21 = vpop.f32.mrf.mxu0  ;;  %v1224_v46 = vpop.f32.mrf.mxu1 }
 0x1a4   : > { %v1245_v26 = vadd.f32 %v1243_v11, %v1231_v18  ;;  %v1232_v27 = vadd.f32 %v1181_v21, %v936_v17  ;;  %v1234_v17 = vadd.f32 %v1224_v46, %v938_v13 }
 0x1a5   : > { %v1183_v28 = vpop.f32.mrf.mxu0  ;;  %v1226_v52 = vpop.f32.mrf.mxu1 }
 0x1a6   : > { %v1616_v31 = vmul.f32 -1.442695, %v1245_v26  ;;  %v1263_v32 = vadd.f32 %v1261_v19, %v1232_v27  ;;  %v1235_v33 = vadd.f32 %v1183_v28, %v939_v25  ;;  %v1237_v59 = vadd.f32 %v1226_v52, %v941_v54 }
 0x1a7   : > { %v1185_v34 = vpop.f32.mrf.mxu0  ;;  %v1228_v21 = vpop.f32.mrf.mxu1 }
 0x1a8   : > { %1910 = vpow2.f32 %v1616_v31  ;;  %v1618_v35 = vmul.f32 -1.442695, %v1263_v32  ;;  %v1246_v36 = vadd.f32 %v1244_v22, %v1235_v33  ;;  %v1236_v37 = vadd.f32 %v1185_v34, %v940_v30 }
 0x1a9   : > { %v942_v22 = vadd.f32 %v932_v40, %v630_v16 }
 0x1aa   : > { %1912 = vpow2.f32 %v1618_v35  ;;  %v1617_v38 = vmul.f32 -1.442695, %v1246_v36  ;;  %v1264_v39 = vadd.f32 %v1262_v29, %v1236_v37 }
 0x1ab   : > { %v1238_v26 = vadd.f32 %v1228_v21, %v942_v22 }
 0x1ac   : > { %1914 = vpow2.f32 %v1617_v38  ;;  %v1619_v41 = vmul.f32 -1.442695, %v1264_v39 }
 0x1ae   : > { %1916 = vpow2.f32 %v1619_v41 }
 0x1b5   : > { %v1911_v48 = vpop.eup %1910 }
 0x1b6   : > { %v1253_v51 = vadd.f32 1.0, %v1911_v48 }
 0x1b7   : > { %v1913_v53 = vpop.eup %1912 }
 0x1b8   : > { %1918 = vrcp.f32 %v1253_v51  ;;  %v1271_v55 = vadd.f32 1.0, %v1913_v53 }
 0x1b9   : > { %v1915_v57 = vpop.eup %1914  ;;  %1920 = vtanh.f32 %v1233_v50 }
 0x1ba   : > { %1922 = vrcp.f32 %v1271_v55  ;;  %v1254_v61 = vadd.f32 1.0, %v1915_v57 }
 0x1bb   : > { %v1917_v56 = vpop.eup %1916 }
 0x1bc   : > { %1924 = vrcp.f32 %v1254_v61  ;;  %v1272_v62 = vadd.f32 1.0, %v1917_v56 }
 0x1bd   : > { %1926 = vtanh.f32 %v1237_v59 }
 0x1be   : > { %1928 = vrcp.f32 %v1272_v62 }
 0x1c5   : > { %v1919_v60 = vpop.eup %1918 }
 0x1c6   : > { %v1921_v1 = vpop.eup %1920 }
 0x1c7   : > { %v1923_v2 = vpop.eup %1922  ;;  %v1281_v8 = vmul.f32 %v1921_v1, %v1919_v60 }
 0x1c8   : > { %v1277_v7 = vmul.f32 %v1923_v2, %v2427_v0 }
 0x1c9   : > { %v1925_v9 = vpop.eup %1924 }
 0x1ca   : > { %v1927_v11 = vpop.eup %1926  ;;  %v1283_v14 = vadd.f32 %v1281_v8, %v1277_v7 }
 0x1cb   : > { %v1929_v15 = vpop.eup %1928  ;;  %v1282_v20 = vmul.f32 %v1927_v11, %v1925_v9 }
 0x1cc   : > { %v1287_v18 = vmul.f32 %v1285_v10, %v1283_v14  ;;  %1307 = vst [vmem:[#allocation3] sm:$0xff] %v1283_v14  ;;  %v1278_v19 = vmul.f32 %v1929_v15, %v2433_v12 }
 0x1ce   : > { %v1289_v23 = vadd.f32 %v1287_v18, %v1234_v17  ;;  %v1284_v0 = vadd.f32 %v1282_v20, %v1278_v19 }
 0x1d0   : > { %v1620_v25 = vmul.f32 -1.442695, %v1289_v23  ;;  %v1288_v24 = vmul.f32 %v1286_v58, %v1284_v0  ;;  %1308 = vst [vmem:[#allocation3 + $0x8] sm:$0xff] %v1284_v0 }
 0x1d2   : > { %1930 = vpow2.f32 %v1620_v25  ;;  %v1290_v27 = vadd.f32 %v1288_v24, %v1238_v26 }
 0x1d4   : > { %v1621_v3 = vmul.f32 -1.442695, %v1290_v27 }
 0x1d6   : > { %1932 = vpow2.f32 %v1621_v3 }
 0x1d7   : > { %1934 = vtanh.f32 %v1283_v14 }
 0x1df   : > { %v1931_v28 = vpop.eup %1930 }
 0x1e0   : > { %v1297_v29 = vadd.f32 1.0, %v1931_v28 }
 0x1e2   : > { %1936 = vrcp.f32 %v1297_v29 }
 0x1e3   : > { %v1933_v12 = vpop.eup %1932  ;;  %1938 = vtanh.f32 %v1284_v0 }
 0x1e4   : > { %v1298_v30 = vadd.f32 1.0, %v1933_v12  ;;  %v1935_v31 = vpop.eup %1934 }
 0x1e6   : > { %1940 = vrcp.f32 %v1298_v30 }
 0x1ef   : > { %v1937_v32 = vpop.eup %1936 }
 0x1f0   : > { %v1305_v33 = vmul.f32 %v1937_v32, %v1935_v31  ;;  %v1939_v34 = vpop.eup %1938 }
 0x1f2   : > { %v1630_v4 = vpack.c.bf16 %v1305_v33, %v1305_v33  ;;  %1350 = vst [vmem:[%s2406_s7] sm:$0xff] %v1305_v33 }
 0x1f3   : > { %v1941_v35 = vpop.eup %1940 }
 0x1f4   : > { %v1306_v36 = vmul.f32 %v1941_v35, %v1939_v34  ;;  %v1319_v37 = vshrl.u32 %v1630_v4, 16  ;;  %v1322_v40 = vshll.u32 %v1630_v4, 16 }
 0x1f6   : > { %v1631_v38 = vpack.c.bf16 %v1306_v36, %v1306_v36  ;;  %v1321_v39 = vrot.slane %v1319_v37, 7  ;;  %1351 = vst [vmem:[%s2406_s7 + $0x8] sm:$0xff] %v1306_v36 }
 0x1f7   : > { %2087 = shalt.err (!%p2084_p11)
}
 0x1f8   : > { %s2088_s4 = scalar_lea.hbm %s2454_s16, 256  ;;  %s2092_s13 = scalar_lea.hbm %s2524_s5, 4096 }
 0x1f9   : > { %p2089_p13 = scmp.ne.s32.totalorder %s2454_s16, %s2088_s4  ;;  %p2093_p9 = scmp.lt.s32.totalorder %s2454_s16, %s2524_s5 }
 0x1fa   : > { %p2094_p3 = scmp.lt.s32.totalorder %s2092_s13, %s2088_s4 }
 0x1fb   : > { %p2090_p6 = pnand %p2089_p13, %p2354_p5 }
 0x1fc   : > { %p2095_p8 = por %p2094_p3, %p2093_p9 }
 0x1fd   : > { %p2091_p10 = pneg %p2090_p6 }
 0x1ff   : > { %p2096_p4 = pnand %p2095_p8, %p2091_p10 }
 0x201   : > { %2099 = shalt.err (!%p2096_p4)
}
 0x202   : > { %s2195_s7 = smov 128   ;;  %s2196_s28 = smov 8   ;;  %v1324_v43 = vor.u32 %v1322_v40, %v1321_v39  ;;  %v1327_v44 = vshrl.u32 %v1631_v38, 16  ;;  %vm1345_vm7 = vcmask 1040384   ;;  %vm1317_vm8 = vmor %vm1315_vm4, %vm1316_vm5  ;;  %v1330_v46 = vshll.u32 %v1631_v38, 16 }
 0x203   : > { %1650 = dma.vmem_to_hbm [thread:$0]  (%p2354_p5), %s2456_s9, 256, %s2454_s16, %s1353_s22, %s2195_s7, %s2195_s7, %s2196_s28   ;;  %vm1346_vm9 = vmand %vm1345_vm7, %vm1315_vm4  ;;  %v1347_v48 = vld [vmem:[#allocation2 + $0x8] sm:$0x1]  ;;  %v1325_v49 = vrot.slane %v1321_v39, 4 }
 0x204   : > { %v1329_v45 = vrot.slane %v1327_v44, 7  ;;  %v1342_v47 = vsel %vm2459_vm6, %v1324_v43, %v1341_v42 }
 0x205   : > { %1343 = vst [vmem:[#allocation2] sm:$0xf] %v1342_v47 }
 0x206   : > { %v1332_v50 = vor.u32 %v1330_v46, %v1329_v45  ;;  %v1334_v51 = vrot.slane %v1329_v45, 4 }
 0x208   : > { %v1333_v52 = vsel %vm1317_vm8, %v1325_v49, %v1332_v50  ;;  %v1348_v53 = vsel %vm1346_vm9, %v1334_v51, %v1347_v48 }
 0x209   : > { %1344 = vst [vmem:[#allocation2 + $0x4] sm:$0xf] %v1333_v52  ;;  %1349 = vst [vmem:[#allocation2 + $0x8] sm:$0x1] %v1348_v53 }
 0x20a PF: > { %s2557_s27 = sld [smem:[#allocation18_spill]]  ;;  %p1682_p5 = scmp.ge.s32.totalorder %s2178_s25, 2 }
 0x20b   : > { %s2558_s30 = sld [smem:[#allocation19_spill]] }
 0x210   : > { %s1383_s11 = sand.u32 1, %s2557_s27  }
 0x211   : > { %p2559_p7 = scmp.ne.s32.totalorder %s2558_s30, 0  ;;  %s1384_s8 = scalar_lea.sflag [#allocation6], %s1383_s11 }
 0x213   : > { %p1670_p2 = pnand %p1682_p5, %p2559_p7 }
 0x215   : > { %p1671_p1 = pneg %p1670_p2 }
 0x217   : > { %2145 = dma.done.wait (%p1671_p1), %s1384_s8, 256  }
 0x218   : > { %2147 = vsyncadd (%p1671_p1), %s1384_s8, 4294967040  ;;  %s23_s25 = sadd.s32 1, %s2178_s25   ;;  %s2560_s9 = sld [smem:[#allocation20_spill]] }
 0x219   : > { %p20_p12 = scmp.ge.s32.totalorder %s23_s25, 18   ;;  %s2561_s18 = smov %s2154_s19 }
 0x21a   : > { %s2562_s19 = smov %s2158_s20  ;;  %s2563_s20 = smov %s2367_s3 }
 0x21b   : > { %s2564_s21 = smov %s2170_s23  ;;  %s2565_s22 = smov %s2174_s24 }
 0x21c   : > { %s2567_s24 = smov %s2573_s15  ;;  %22 = sbr.rel (!%p20_p12) target bundleno = 14 (0xe), region = 107 }
 0x21e   : > { %s2566_s23 = smov %s2560_s9 }
 0x221   :  { %1389 = vsyncpa [#allocation5], 1 }
 0x222   :  { %1391 = vsyncpa [#allocation5 + $0x1], 1 }
 0x223   :  { %1392 = vsyncpa [#allocation8], 1 }
 0x224   :  { %1393 = vsyncpa [#allocation11], 1 }
 0x225   :  { %1394 = vsyncpa [#allocation6], 1 }
 0x226   :  { %1396 = vsyncpa [#allocation6 + $0x1], 1 }

</bundles_post_ra>
